<compile_context>
chip_gen: v7x
topology: tpu7x:2x2x1
jax: 0.10.0
libtpu: 0.0.40
codegen_flags: <defaults>
</compile_context>

<pallas_src>
import functools

import jax
import jax.numpy as jnp
from jax.experimental import pallas as pl
from jax.experimental.pallas import tpu as pltpu


def _round_up(n: int, m: int) -> int:
    return ((n + m - 1) // m) * m


# ----------------------------------------------------------------------------
# Fused Pallas kernel: whole MLP in one call.
#   t_ref   : (1,)            SMEM  — the scalar t
#   x_ref   : (B_pad, P)      VMEM  — x features, zero-padded (no t column)
#   w0t_ref : (1, P)          VMEM  — row of W0 that multiplies t, padded
#   ws_ref  : (L, P, P)       VMEM  — all layer weights, zero-padded
#   bs_ref  : (L, 1, P)       VMEM  — all layer biases, zero-padded
#   o_ref   : (B_pad, P)      VMEM  — padded output (lane-dense store)
# ----------------------------------------------------------------------------
def _mlp_fused_kernel(t_ref, x_ref, w0t_ref, ws_ref, bs_ref, o_ref, *, n_layers: int):
    t = t_ref[0]
    inv_sqrt2 = jnp.float32(0.7071067811865476)

    def gelu(y):
        # Exact GELU (matches torch.nn.GELU default).
        return 0.5 * y * (1.0 + jax.lax.erf(y * inv_sqrt2))

    # Layer 0: x @ W0[:din_x] + t * W0[din_x] + b0   (t-concat folded in)
    h = jnp.dot(x_ref[...], ws_ref[0], preferred_element_type=jnp.float32)
    h = h + t * w0t_ref[...] + bs_ref[0]
    h = gelu(h)

    # Hidden layers.
    for i in range(1, n_layers - 1):
        h = jnp.dot(h, ws_ref[i], preferred_element_type=jnp.float32) + bs_ref[i]
        h = gelu(h)

    # Final layer (no activation).
    h = jnp.dot(h, ws_ref[n_layers - 1], preferred_element_type=jnp.float32)
    h = h + bs_ref[n_layers - 1]
    o_ref[...] = h.astype(o_ref.dtype)


# ----------------------------------------------------------------------------
# Parameter init + packing (pad once, up front)
# ----------------------------------------------------------------------------
def init_mlp_params(key, input_dim, hidden_dim, output_dim, hidden_layers):
    dims = [input_dim] + [hidden_dim] * (hidden_layers + 1) + [output_dim]
    params = []
    for din, dout in zip(dims[:-1], dims[1:]):
        key, kw, kb = jax.random.split(key, 3)
        bound = 1.0 / jnp.sqrt(jnp.float32(din))
        w = jax.random.uniform(kw, (din, dout), jnp.float32, -bound, bound)
        b = jax.random.uniform(kb, (dout,), jnp.float32, -bound, bound)
        params.append((w, b))
    return params


def pack_params(params, input_dim):
    """Zero-pad all weights/biases to 128-lane tiles and stack them.

    Returns (w0t, ws, bs, pad):
      w0t: (1, P)    row of W0 that multiplies the appended t scalar
      ws : (L, P, P) stacked padded weights (W0's t-row removed)
      bs : (L, 1, P) stacked padded biases
    """
    max_dim = max([input_dim - 1] + [w.shape[1] for (w, _) in params])
    pad = _round_up(max(max_dim, 1), 128)
    L = len(params)

    ws = jnp.zeros((L, pad, pad), jnp.float32)
    bs = jnp.zeros((L, 1, pad), jnp.float32)

    w0, b0 = params[0]
    din_x = input_dim - 1                       # x contributes input_dim-1 cols
    w0t = jnp.zeros((1, pad), jnp.float32).at[0, : w0.shape[1]].set(w0[din_x])
    ws = ws.at[0, :din_x, : w0.shape[1]].set(w0[:din_x])
    bs = bs.at[0, 0, : b0.shape[0]].set(b0)

    for i, (w, b) in enumerate(params[1:], start=1):
        ws = ws.at[i, : w.shape[0], : w.shape[1]].set(w)
        bs = bs.at[i, 0, : b.shape[0]].set(b)

    return w0t, ws, bs, pad


# ----------------------------------------------------------------------------
# Forward wrapper
# ----------------------------------------------------------------------------
@functools.partial(jax.jit, static_argnames=("output_dim",))
def mlp_forward(packed, x, t, *, output_dim):
    w0t, ws, bs = packed
    L, pad, _ = ws.shape
    B, din_x = x.shape
    B_pad = _round_up(max(B, 8), 8)

    # Zero-pad x to a lane-dense (B_pad, pad) slab.
    x_pad = jnp.zeros((B_pad, pad), jnp.float32).at[:B, :din_x].set(x)
    t_arr = jnp.asarray(t, jnp.float32).reshape(1)

    vmem = pl.BlockSpec(memory_space=pltpu.MemorySpace.VMEM)
    smem = pl.BlockSpec(memory_space=pltpu.MemorySpace.SMEM)

    out_pad = pl.pallas_call(
        functools.partial(_mlp_fused_kernel, n_layers=L),
        out_shape=jax.ShapeDtypeStruct((B_pad, pad), jnp.float32),
        in_specs=[smem, vmem, vmem, vmem, vmem],
        out_specs=vmem,
    )(t_arr, x_pad, w0t, ws, bs)

    return out_pad[:B, :output_dim]


# ----------------------------------------------------------------------------
if __name__ == "__main__":
    # cfg: input_dim=8 (x provides 7 features, +1 for t), hidden_dim=32,
    #      hidden_layers=2, output_dim=4; batch=8.
    input_dim, hidden_dim, output_dim, hidden_layers = 8, 32, 4, 2
    batch = 8

    key = jax.random.PRNGKey(0)
    key, kx = jax.random.split(key)
    x = jax.random.normal(kx, (batch, input_dim - 1), dtype=jnp.float32)
    t = jnp.float32(0.5)

    params = init_mlp_params(key, input_dim, hidden_dim, output_dim, hidden_layers)
    w0t, ws, bs, _ = pack_params(params, input_dim)

    out = mlp_forward((w0t, ws, bs), x, t, output_dim=output_dim)
    jax.block_until_ready(out)

    # Pure-JAX reference (mirrors the PyTorch module exactly).
    def ref_forward(params, x, t):
        h = jnp.concatenate([x, jnp.full((x.shape[0], 1), t, x.dtype)], axis=-1)
        for i, (w, b) in enumerate(params):
            h = h @ w + b
            if i != len(params) - 1:
                h = 0.5 * h * (1.0 + jax.lax.erf(h / jnp.sqrt(2.0)))
        return h

    ref = ref_forward(params, x, t)
    assert out.shape == (batch, output_dim)
    assert jnp.allclose(out, ref, atol=1e-5, rtol=1e-5)

    print("KERNEL_OK")
</pallas_src>

<mosaic_0001>
module attributes {stable_mosaic.version = 11 : i64} {
  func.func @_mlp_fused_kernel(%arg0: memref<1xf32, #tpu.memory_space<smem>>, %arg1: memref<8x128xf32, #tpu.memory_space<vmem>>, %arg2: memref<1x128xf32, #tpu.memory_space<vmem>>, %arg3: memref<4x128x128xf32, #tpu.memory_space<vmem>>, %arg4: memref<4x1x128xf32, #tpu.memory_space<vmem>>, %arg5: memref<8x128xf32, #tpu.memory_space<vmem>>) attributes {dimension_semantics = [], scalar_prefetch = 0 : i64, scratch_operands = 0 : i64, tpu.core_type = #tpu.core_type<tc>} {
    %c0 = arith.constant 0 : index
    %0 = memref.load %arg0[%c0] : memref<1xf32, #tpu.memory_space<smem>>
    %c0_0 = arith.constant 0 : index
    %c0_1 = arith.constant 0 : index
    %1 = vector.load %arg1[%c0_0, %c0_1] : memref<8x128xf32, #tpu.memory_space<vmem>>, vector<8x128xf32>
    %c0_2 = arith.constant 0 : index
    %c0_3 = arith.constant 0 : index
    %c0_4 = arith.constant 0 : index
    %2 = vector.load %arg3[%c0_2, %c0_3, %c0_4] : memref<4x128x128xf32, #tpu.memory_space<vmem>>, vector<1x128x128xf32>
    %3 = vector.shape_cast %2 : vector<1x128x128xf32> to vector<128x128xf32>
    %cst = arith.constant dense<0.000000e+00> : vector<8x128xf32>
    %4 = tpu.matmul %1, %3, %cst {dimension_numbers = #tpu.dot_dimension_numbers<[1], [0], [0], [1], [0, 0, 1, 1], [], []>} : vector<8x128xf32>, vector<128x128xf32>, vector<8x128xf32> -> vector<8x128xf32>
    %c0_5 = arith.constant 0 : index
    %c0_6 = arith.constant 0 : index
    %5 = vector.load %arg2[%c0_5, %c0_6] : memref<1x128xf32, #tpu.memory_space<vmem>>, vector<1x128xf32>
    %6 = vector.broadcast %0 : f32 to vector<1x128xf32>
    %7 = arith.mulf %6, %5 : vector<1x128xf32>
    %8 = vector.broadcast %7 : vector<1x128xf32> to vector<8x128xf32>
    %9 = arith.addf %4, %8 : vector<8x128xf32>
    %c0_7 = arith.constant 0 : index
    %c0_8 = arith.constant 0 : index
    %c0_9 = arith.constant 0 : index
    %10 = vector.load %arg4[%c0_7, %c0_8, %c0_9] : memref<4x1x128xf32, #tpu.memory_space<vmem>>, vector<1x1x128xf32>
    %11 = vector.shape_cast %10 : vector<1x1x128xf32> to vector<1x128xf32>
    %12 = vector.broadcast %11 : vector<1x128xf32> to vector<8x128xf32>
    %13 = arith.addf %9, %12 : vector<8x128xf32>
    %cst_10 = arith.constant 5.000000e-01 : f32
    %14 = vector.broadcast %cst_10 : f32 to vector<8x128xf32>
    %15 = arith.mulf %14, %13 : vector<8x128xf32>
    %cst_11 = arith.constant 0.707106769 : f32
    %16 = vector.broadcast %cst_11 : f32 to vector<8x128xf32>
    %17 = arith.mulf %13, %16 : vector<8x128xf32>
    %18 = math.erf %17 : vector<8x128xf32>
    %cst_12 = arith.constant 1.000000e+00 : f32
    %19 = vector.broadcast %cst_12 : f32 to vector<8x128xf32>
    %20 = arith.addf %19, %18 : vector<8x128xf32>
    %21 = arith.mulf %15, %20 : vector<8x128xf32>
    %c1 = arith.constant 1 : index
    %c0_13 = arith.constant 0 : index
    %c0_14 = arith.constant 0 : index
    %22 = vector.load %arg3[%c1, %c0_13, %c0_14] : memref<4x128x128xf32, #tpu.memory_space<vmem>>, vector<1x128x128xf32>
    %23 = vector.shape_cast %22 : vector<1x128x128xf32> to vector<128x128xf32>
    %cst_15 = arith.constant dense<0.000000e+00> : vector<8x128xf32>
    %24 = tpu.matmul %21, %23, %cst_15 {dimension_numbers = #tpu.dot_dimension_numbers<[1], [0], [0], [1], [0, 0, 1, 1], [], []>} : vector<8x128xf32>, vector<128x128xf32>, vector<8x128xf32> -> vector<8x128xf32>
    %c1_16 = arith.constant 1 : index
    %c0_17 = arith.constant 0 : index
    %c0_18 = arith.constant 0 : index
    %25 = vector.load %arg4[%c1_16, %c0_17, %c0_18] : memref<4x1x128xf32, #tpu.memory_space<vmem>>, vector<1x1x128xf32>
    %26 = vector.shape_cast %25 : vector<1x1x128xf32> to vector<1x128xf32>
    %27 = vector.broadcast %26 : vector<1x128xf32> to vector<8x128xf32>
    %28 = arith.addf %24, %27 : vector<8x128xf32>
    %cst_19 = arith.constant 5.000000e-01 : f32
    %29 = vector.broadcast %cst_19 : f32 to vector<8x128xf32>
    %30 = arith.mulf %29, %28 : vector<8x128xf32>
    %cst_20 = arith.constant 0.707106769 : f32
    %31 = vector.broadcast %cst_20 : f32 to vector<8x128xf32>
    %32 = arith.mulf %28, %31 : vector<8x128xf32>
    %33 = math.erf %32 : vector<8x128xf32>
    %cst_21 = arith.constant 1.000000e+00 : f32
    %34 = vector.broadcast %cst_21 : f32 to vector<8x128xf32>
    %35 = arith.addf %34, %33 : vector<8x128xf32>
    %36 = arith.mulf %30, %35 : vector<8x128xf32>
    %c2 = arith.constant 2 : index
    %c0_22 = arith.constant 0 : index
    %c0_23 = arith.constant 0 : index
    %37 = vector.load %arg3[%c2, %c0_22, %c0_23] : memref<4x128x128xf32, #tpu.memory_space<vmem>>, vector<1x128x128xf32>
    %38 = vector.shape_cast %37 : vector<1x128x128xf32> to vector<128x128xf32>
    %cst_24 = arith.constant dense<0.000000e+00> : vector<8x128xf32>
    %39 = tpu.matmul %36, %38, %cst_24 {dimension_numbers = #tpu.dot_dimension_numbers<[1], [0], [0], [1], [0, 0, 1, 1], [], []>} : vector<8x128xf32>, vector<128x128xf32>, vector<8x128xf32> -> vector<8x128xf32>
    %c2_25 = arith.constant 2 : index
    %c0_26 = arith.constant 0 : index
    %c0_27 = arith.constant 0 : index
    %40 = vector.load %arg4[%c2_25, %c0_26, %c0_27] : memref<4x1x128xf32, #tpu.memory_space<vmem>>, vector<1x1x128xf32>
    %41 = vector.shape_cast %40 : vector<1x1x128xf32> to vector<1x128xf32>
    %42 = vector.broadcast %41 : vector<1x128xf32> to vector<8x128xf32>
    %43 = arith.addf %39, %42 : vector<8x128xf32>
    %cst_28 = arith.constant 5.000000e-01 : f32
    %44 = vector.broadcast %cst_28 : f32 to vector<8x128xf32>
    %45 = arith.mulf %44, %43 : vector<8x128xf32>
    %cst_29 = arith.constant 0.707106769 : f32
    %46 = vector.broadcast %cst_29 : f32 to vector<8x128xf32>
    %47 = arith.mulf %43, %46 : vector<8x128xf32>
    %48 = math.erf %47 : vector<8x128xf32>
    %cst_30 = arith.constant 1.000000e+00 : f32
    %49 = vector.broadcast %cst_30 : f32 to vector<8x128xf32>
    %50 = arith.addf %49, %48 : vector<8x128xf32>
    %51 = arith.mulf %45, %50 : vector<8x128xf32>
    %c3 = arith.constant 3 : index
    %c0_31 = arith.constant 0 : index
    %c0_32 = arith.constant 0 : index
    %52 = vector.load %arg3[%c3, %c0_31, %c0_32] : memref<4x128x128xf32, #tpu.memory_space<vmem>>, vector<1x128x128xf32>
    %53 = vector.shape_cast %52 : vector<1x128x128xf32> to vector<128x128xf32>
    %cst_33 = arith.constant dense<0.000000e+00> : vector<8x128xf32>
    %54 = tpu.matmul %51, %53, %cst_33 {dimension_numbers = #tpu.dot_dimension_numbers<[1], [0], [0], [1], [0, 0, 1, 1], [], []>} : vector<8x128xf32>, vector<128x128xf32>, vector<8x128xf32> -> vector<8x128xf32>
    %c3_34 = arith.constant 3 : index
    %c0_35 = arith.constant 0 : index
    %c0_36 = arith.constant 0 : index
    %55 = vector.load %arg4[%c3_34, %c0_35, %c0_36] : memref<4x1x128xf32, #tpu.memory_space<vmem>>, vector<1x1x128xf32>
    %56 = vector.shape_cast %55 : vector<1x1x128xf32> to vector<1x128xf32>
    %57 = vector.broadcast %56 : vector<1x128xf32> to vector<8x128xf32>
    %58 = arith.addf %54, %57 : vector<8x128xf32>
    %c0_37 = arith.constant 0 : index
    %c0_38 = arith.constant 0 : index
    %59 = vector.load %arg5[%c0_37, %c0_38] : memref<8x128xf32, #tpu.memory_space<vmem>>, vector<8x128xf32>
    tpu.vector_store %arg5[%c0_37, %c0_38], %58 {strides = array<i32>} : memref<8x128xf32, #tpu.memory_space<vmem>>, vector<8x128xf32>,
    return
  }
}

</mosaic_0001>

<bundles_post_ra>
// kernel: mlp_forward.1
= control target key start
LH: loop header
LB: loop body
LE: loop exit
PB: predicated region body
PF: predicated region fallthrough
CT: control target
= control target key end

     0   :  { %11 = vsyncpa [#allocation4], 0  ;;  %s793_s18 = smov [#allocation3]   ;;  %s905_s0 = inlined_call_operand.<no memory space> [shape: f32[1], index: 0, kind: input, shape index: {}]   ;;  %s906_s1 = inlined_call_operand.vmem [shape: f32[8,128], index: 1, kind: input, shape index: {}]   ;;  %s907_s2 = inlined_call_operand.vmem [shape: f32[1,128], index: 2, kind: input, shape index: {}]   ;;  %s908_s3 = inlined_call_operand.hbm [shape: f32[4,128,128], index: 3, kind: input, shape index: {}]   ;;  %s909_s4 = inlined_call_operand.vmem [shape: f32[4,1,128], index: 4, kind: input, shape index: {}]   ;;  %s910_s5 = inlined_call_operand.vmem [shape: f32[8,128], index: 5, kind: output, shape index: {}]  }
   0x1   :  { %s23_s19 = sshll.u32 %s793_s18, 4  ;;  %s769_s22 = scalar_lea.hbm %s908_s3, 8192  ;;  %s24_s19 = int_to_ptr.vmem [resolvable:$true] %s23_s19 }
   0x2   :  { %p770_p0 = scmp.ne.s32.totalorder %s908_s3, %s769_s22  ;;  %p773_p1 = scmp.lt.u32.totalorder %s769_s22, %s908_s3 }
   0x4   :  { %p775_p2 = pnand %p773_p1, %p770_p0 }
   0x6   :  { %778 = shalt.err (!%p775_p2)
}
   0x7   :  { %s779_s27 = scalar_lea.vmem %s24_s19, 8192  ;;  %p784_p4 = scmp.lt.s32.totalorder %s24_s19, %s24_s19 }
   0x8   :  { %p780_p3 = scmp.ne.s32.totalorder %s24_s19, %s779_s27  ;;  %p785_p5 = scmp.lt.s32.totalorder %s779_s27, %s779_s27 }
   0xa   :  { %p786_p6 = por %p785_p5, %p784_p4 }
   0xc   :  { %p787_p7 = pnand %p786_p6, %p780_p3 }
   0xe   :  { %790 = shalt.err (!%p787_p7)
}
   0xf   :  { %s794_s28 = smov 128   ;;  %s795_s29 = smov 8  }
  0x10   :  { %29 = dma.hbm_to_vmem [thread:$0]  %s908_s3, 8192, %s24_s19, [#allocation4], %s794_s28, %s794_s28, %s795_s29  }
  0x11   :  { %791 = dma.done.wait [#allocation4], 8192  }
  0x12   :  { %792 = vsyncadd [#allocation4], 4294959104  ;;  %v796_v0 = vmov 0.0|0.0   ;;  %vm797_vm0 = vmmov 0   ;;  %v798_v1 = vmov 0.0   ;;  %v37_v2 = vld [vmem:[#allocation3] sm:$0xff]  ;;  %v57_v60 = vlaneseq }
  0x13   :  { %661 = vmatprep.subr.bf16.mxu0 %v796_v0  ;;  %553 = vmatprep.mubr.msk.f32.mxu0 %vm797_vm0, %v798_v1  ;;  %v38_v3 = vld [vmem:[#allocation3 + $0x8] sm:$0xff]  ;;  %v39_v4 = vld [vmem:[#allocation3 + $0x10] sm:$0xff]  ;;  %v40_v6 = vld [vmem:[#allocation3 + $0x18] sm:$0xff]  ;;  %v54_v63 = vstv %s905_s0 }
  0x14   :  { %685 = vmatprep.subr.bf16.mxu1 %v796_v0  ;;  %588 = vmatprep.mubr.msk.f32.mxu1 %vm797_vm0, %v798_v1  ;;  %v662_v5 = vpack.c.bf16 %v38_v3, %v37_v2  ;;  %v665_v7 = vpack.c.bf16 %v40_v6, %v39_v4  ;;  %v41_v8 = vld [vmem:[#allocation3 + $0x20] sm:$0xff]  ;;  %v42_v9 = vld [vmem:[#allocation3 + $0x28] sm:$0xff]  ;;  %v148_v12 = vld [vmem:[#allocation3 + $0x90] sm:$0xff]  ;;  %v58_v61 = vshrl.u32 %v57_v60, 7 }
  0x15   :  { %v146_v10 = vld [vmem:[#allocation3 + $0x80] sm:$0xff]  ;;  %v147_v11 = vld [vmem:[#allocation3 + $0x88] sm:$0xff]  ;;  %v149_v13 = vld [vmem:[#allocation3 + $0x98] sm:$0xff]  ;;  %v668_v14 = vpack.c.bf16 %v42_v9, %v41_v8 }
  0x16   :  { %663 = vmatpush3.bf16.msra.mxu0 %v662_v5  ;;  %v686_v15 = vpack.c.bf16 %v147_v11, %v146_v10  ;;  %v43_v16 = vld [vmem:[#allocation3 + $0x30] sm:$0xff]  ;;  %v44_v17 = vld [vmem:[#allocation3 + $0x38] sm:$0xff]  ;;  %v689_v18 = vpack.c.bf16 %v149_v13, %v148_v12  ;;  %v150_v19 = vld [vmem:[#allocation3 + $0xa0] sm:$0xff]  ;;  %v59_v3 = vsub.s32 0, %v58_v61 }
  0x17   :  { %664 = vmatprep.subr.bf16.mxu0 %v796_v0  ;;  %v151_v20 = vld [vmem:[#allocation3 + $0xa8] sm:$0xff]  ;;  %v671_v21 = vpack.c.bf16 %v44_v17, %v43_v16  ;;  %v45_v22 = vld [vmem:[#allocation3 + $0x40] sm:$0xff]  ;;  %v47_v26 = vld [vmem:[#allocation3 + $0x50] sm:$0xff] }
  0x18   :  { %687 = vmatpush3.bf16.msra.mxu1 %v686_v15  ;;  %v46_v23 = vld [vmem:[#allocation3 + $0x48] sm:$0xff]  ;;  %v692_v24 = vpack.c.bf16 %v151_v20, %v150_v19  ;;  %v48_v27 = vld [vmem:[#allocation3 + $0x58] sm:$0xff]  ;;  %v49_v29 = vld [vmem:[#allocation3 + $0x60] sm:$0xff] }
  0x19   :  { %688 = vmatprep.subr.bf16.mxu1 %v796_v0  ;;  %v674_v25 = vpack.c.bf16 %v46_v23, %v45_v22  ;;  %v677_v28 = vpack.c.bf16 %v48_v27, %v47_v26  ;;  %v50_v30 = vld [vmem:[#allocation3 + $0x68] sm:$0xff]  ;;  %v51_v32 = vld [vmem:[#allocation3 + $0x70] sm:$0xff]  ;;  %v52_v33 = vld [vmem:[#allocation3 + $0x78] sm:$0xff] }
  0x1a   :  { %666 = vmatpush3.bf16.msra.mxu0 %v665_v7  ;;  %v680_v31 = vpack.c.bf16 %v50_v30, %v49_v29  ;;  %v683_v34 = vpack.c.bf16 %v52_v33, %v51_v32  ;;  %v36_v35 = vld [vmem:[%s906_s1] sm:$0xff]  ;;  %v152_v36 = vld [vmem:[#allocation3 + $0xb0] sm:$0xff]  ;;  %v153_v37 = vld [vmem:[#allocation3 + $0xb8] sm:$0xff] }
  0x1b   :  { %667 = vmatprep.subr.bf16.mxu0 %v796_v0  ;;  %v695_v38 = vpack.c.bf16 %v153_v37, %v152_v36  ;;  %v154_v39 = vld [vmem:[#allocation3 + $0xc0] sm:$0xff]  ;;  %v155_v40 = vld [vmem:[#allocation3 + $0xc8] sm:$0xff]  ;;  %v156_v42 = vld [vmem:[#allocation3 + $0xd0] sm:$0xff] }
  0x1c   :  { %690 = vmatpush3.bf16.msra.mxu1 %v689_v18  ;;  %v698_v41 = vpack.c.bf16 %v155_v40, %v154_v39  ;;  %v157_v43 = vld [vmem:[#allocation3 + $0xd8] sm:$0xff]  ;;  %v158_v45 = vld [vmem:[#allocation3 + $0xe0] sm:$0xff]  ;;  %v159_v46 = vld [vmem:[#allocation3 + $0xe8] sm:$0xff] }
  0x1d   :  { %691 = vmatprep.subr.bf16.mxu1 %v796_v0  ;;  %v701_v44 = vpack.c.bf16 %v157_v43, %v156_v42  ;;  %v704_v47 = vpack.c.bf16 %v159_v46, %v158_v45  ;;  %v160_v48 = vld [vmem:[#allocation3 + $0xf0] sm:$0xff]  ;;  %v161_v49 = vld [vmem:[#allocation3 + $0xf8] sm:$0xff]  ;;  %v246_v51 = vld [vmem:[#allocation3 + $0x100] sm:$0xff] }
  0x1e   :  { %669 = vmatpush3.bf16.msra.mxu0 %v668_v14  ;;  %v707_v50 = vpack.c.bf16 %v161_v49, %v160_v48  ;;  %v247_v52 = vld [vmem:[#allocation3 + $0x108] sm:$0xff]  ;;  %v248_v53 = vld [vmem:[#allocation3 + $0x110] sm:$0xff]  ;;  %v249_v55 = vld [vmem:[#allocation3 + $0x118] sm:$0xff] }
  0x1f   :  { %670 = vmatprep.subr.bf16.mxu0 %v796_v0  ;;  %v710_v54 = vpack.c.bf16 %v247_v52, %v246_v51  ;;  %v713_v56 = vpack.c.bf16 %v249_v55, %v248_v53  ;;  %v250_v57 = vld [vmem:[#allocation3 + $0x120] sm:$0xff]  ;;  %v251_v58 = vld [vmem:[#allocation3 + $0x128] sm:$0xff]  ;;  %v252_v15 = vld [vmem:[#allocation3 + $0x130] sm:$0xff] }
  0x20   :  { %693 = vmatpush3.bf16.msra.mxu1 %v692_v24  ;;  %v716_v59 = vpack.c.bf16 %v251_v58, %v250_v57  ;;  %v53_v62 = vld [vmem:[%s907_s2] sm:$0x1]  ;;  %v253_v16 = vld [vmem:[#allocation3 + $0x138] sm:$0xff]  ;;  %v255_v19 = vld [vmem:[#allocation3 + $0x148] sm:$0xff] }
  0x21   :  { %694 = vmatprep.subr.bf16.mxu1 %v796_v0  ;;  %v55_v2 = vmul.f32 %v54_v63, %v53_v62  ;;  %v446_v6 = vld [vmem:[%s909_s4] ss:$0 sm:$0xff]  ;;  %v719_v17 = vpack.c.bf16 %v253_v16, %v252_v15  ;;  %v257_v22 = vld [vmem:[#allocation3 + $0x158] sm:$0xff]  ;;  %v260_v26 = vld [vmem:[#allocation3 + $0x170] sm:$0xff] }
  0x22   :  { %672 = vmatpush3.bf16.msra.mxu0 %v671_v21  ;;  %v254_v18 = vld [vmem:[#allocation3 + $0x140] sm:$0xff]  ;;  %v256_v21 = vld [vmem:[#allocation3 + $0x150] sm:$0xff]  ;;  %v261_v27 = vld [vmem:[#allocation3 + $0x178] sm:$0xff] }
  0x23   :  { %673 = vmatprep.subr.bf16.mxu0 %v796_v0  ;;  %v60_v4 = vrot.slane %v55_v2, %v59_v3  ;;  %v722_v20 = vpack.c.bf16 %v255_v19, %v254_v18  ;;  %v725_v23 = vpack.c.bf16 %v257_v22, %v256_v21  ;;  %v258_v24 = vld [vmem:[#allocation3 + $0x160] sm:$0xff]  ;;  %v347_v30 = vld [vmem:[#allocation3 + $0x188] sm:$0xff]  ;;  %v349_v33 = vld [vmem:[#allocation3 + $0x198] sm:$0xff] }
  0x24   :  { %696 = vmatpush3.bf16.msra.mxu1 %v695_v38  ;;  %v346_v29 = vld [vmem:[#allocation3 + $0x180] sm:$0xff]  ;;  %v351_v36 = vld [vmem:[#allocation3 + $0x1a8] sm:$0xff]  ;;  %v353_v48 = vld [vmem:[#allocation3 + $0x1b8] sm:$0xff] }
  0x25   :  { %697 = vmatprep.subr.bf16.mxu1 %v796_v0  ;;  %v734_v32 = vpack.c.bf16 %v347_v30, %v346_v29  ;;  %v448_v38 = vld [vmem:[%s909_s4 + $0x1] ss:$0 sm:$0xff]  ;;  %v355_v51 = vld [vmem:[#allocation3 + $0x1c8] sm:$0xff]  ;;  %v356_v53 = vld [vmem:[#allocation3 + $0x1d0] sm:$0xff] }
  0x26   :  { %675 = vmatpush3.bf16.msra.mxu0 %v674_v25  ;;  %v359_v57 = vld [vmem:[#allocation3 + $0x1e8] sm:$0xff]  ;;  %v361_v60 = vld [vmem:[#allocation3 + $0x1f8] sm:$0xff]  ;;  %v450_v62 = vld [vmem:[%s909_s4 + $0x2] ss:$0 sm:$0xff] }
  0x27   :  { %676 = vmatprep.subr.bf16.mxu0 %v796_v0 }
  0x28   :  { %699 = vmatpush3.bf16.msra.mxu1 %v698_v41 }
  0x29   :  { %700 = vmatprep.subr.bf16.mxu1 %v796_v0 }
  0x2a   :  { %678 = vmatpush3.bf16.msra.mxu0 %v677_v28  ;;  %v731_v28 = vpack.c.bf16 %v261_v27, %v260_v26 }
  0x2b   :  { %679 = vmatprep.subr.bf16.mxu0 %v796_v0 }
  0x2c   :  { %702 = vmatpush3.bf16.msra.mxu1 %v701_v44 }
  0x2d   :  { %703 = vmatprep.subr.bf16.mxu1 %v796_v0 }
  0x2e   :  { %681 = vmatpush3.bf16.msra.mxu0 %v680_v31  ;;  %v348_v31 = vld [vmem:[#allocation3 + $0x190] sm:$0xff] }
  0x2f   :  { %682 = vmatprep.subr.bf16.mxu0 %v796_v0 }
  0x30   :  { %705 = vmatpush3.bf16.msra.mxu1 %v704_v47  ;;  %v352_v47 = vld [vmem:[#allocation3 + $0x1b0] sm:$0xff] }
  0x31   :  { %706 = vmatprep.subr.bf16.mxu1 %v796_v0  ;;  %v743_v49 = vpack.c.bf16 %v353_v48, %v352_v47 }
  0x32   :  { %684 = vmatpush3.bf16.msra.mxu0 %v683_v34  ;;  %v737_v34 = vpack.c.bf16 %v349_v33, %v348_v31 }
  0x33   :  { %709 = vmatprep.subr.bf16.mxu0 %v796_v0 }
  0x34   :  { %708 = vmatpush3.bf16.msra.mxu1 %v707_v50  ;;  %v354_v50 = vld [vmem:[#allocation3 + $0x1c0] sm:$0xff] }
  0x35   :  { %554 = vmatmul.mubr.f32.vlgmr.msra.gmra.mrb[0].mxu0 %v36_v35  ;;  %733 = vmatprep.subr.bf16.mxu1 %v796_v0  ;;  %v350_v35 = vld [vmem:[#allocation3 + $0x1a0] sm:$0xff]  ;;  %v746_v52 = vpack.c.bf16 %v355_v51, %v354_v50 }
  0x36   :  { %623 = vmatprep.mubr.msk.f32.mxu0 %vm797_vm0, %v798_v1  ;;  %711 = vmatpush3.bf16.msra.mxu0 %v710_v54  ;;  %v740_v37 = vpack.c.bf16 %v351_v36, %v350_v35  ;;  %v357_v54 = vld [vmem:[#allocation3 + $0x1d8] sm:$0xff] }
  0x37   :  { %712 = vmatprep.subr.bf16.mxu0 %v796_v0  ;;  %v749_v55 = vpack.c.bf16 %v357_v54, %v356_v53 }
  0x3a   :  { %714 = vmatpush3.bf16.msra.mxu0 %v713_v56  ;;  %v358_v56 = vld [vmem:[#allocation3 + $0x1e0] sm:$0xff] }
  0x3b   :  { %715 = vmatprep.subr.bf16.mxu0 %v796_v0  ;;  %v752_v58 = vpack.c.bf16 %v359_v57, %v358_v56 }
  0x3e   :  { %717 = vmatpush3.bf16.msra.mxu0 %v716_v59  ;;  %v360_v59 = vld [vmem:[#allocation3 + $0x1f0] sm:$0xff] }
  0x3f   :  { %718 = vmatprep.subr.bf16.mxu0 %v796_v0  ;;  %v755_v61 = vpack.c.bf16 %v361_v60, %v360_v59 }
  0x42   :  { %720 = vmatpush3.bf16.msra.mxu0 %v719_v17 }
  0x43   :  { %721 = vmatprep.subr.bf16.mxu0 %v796_v0 }
  0x46   :  { %723 = vmatpush3.bf16.msra.mxu0 %v722_v20 }
  0x47   :  { %724 = vmatprep.subr.bf16.mxu0 %v796_v0 }
  0x4a   :  { %726 = vmatpush3.bf16.msra.mxu0 %v725_v23 }
  0x4b   :  { %727 = vmatprep.subr.bf16.mxu0 %v796_v0 }
 0x108   :  { %v128_v5 = vpop.f32.mrb[0].mxu0 }
 0x109   :  { %v129_v7 = vadd.f32 %v128_v5, %v60_v4  ;;  %v555_v8 = vpop.f32.mrb[1].mxu0 }
 0x10b   :  { %v139_v9 = vadd.f32 %v446_v6, %v129_v7 }
 0x10d   :  { %v141_v10 = vmul.f32 0.70710677, %v139_v9  ;;  %v140_v12 = vmul.f32 0.5, %v139_v9 }
 0x10f   :  { %763 = verf.f32 %v141_v10 }
 0x119   :  { %v764_v11 = vpop.eup %763 }
 0x11a   :  { %v143_v13 = vadd.f32 1.0, %v764_v11 }
 0x11c   :  { %v144_v14 = vmul.f32 %v143_v13, %v140_v12 }
 0x11e   :  { %589 = vmatmul.mubr.f32.vlgmr.msra.gmra.mrb[0].mxu1 %v144_v14 }
 0x11f   :  { %658 = vmatprep.mubr.msk.f32.mxu1 %vm797_vm0, %v798_v1  ;;  %v259_v1 = vld [vmem:[#allocation3 + $0x168] sm:$0xff]  ;;  %735 = vmatpush3.bf16.msra.mxu1 %v734_v32 }
 0x120   :  { %v728_v25 = vpack.c.bf16 %v259_v1, %v258_v24  ;;  %736 = vmatprep.subr.bf16.mxu1 %v796_v0 }
 0x122   :  { %729 = vmatpush3.bf16.msra.mxu0 %v728_v25 }
 0x123   :  { %730 = vmatprep.subr.bf16.mxu0 %v796_v0  ;;  %738 = vmatpush3.bf16.msra.mxu1 %v737_v34 }
 0x124   :  { %739 = vmatprep.subr.bf16.mxu1 %v796_v0 }
 0x126   :  { %732 = vmatpush3.bf16.msra.mxu0 %v731_v28 }
 0x127   :  { %741 = vmatpush3.bf16.msra.mxu1 %v740_v37 }
 0x128   :  { %742 = vmatprep.subr.bf16.mxu1 %v796_v0 }
 0x12b   :  { %744 = vmatpush3.bf16.msra.mxu1 %v743_v49 }
 0x12c   :  { %745 = vmatprep.subr.bf16.mxu1 %v796_v0 }
 0x12f   :  { %747 = vmatpush3.bf16.msra.mxu1 %v746_v52 }
 0x130   :  { %748 = vmatprep.subr.bf16.mxu1 %v796_v0 }
 0x133   :  { %750 = vmatpush3.bf16.msra.mxu1 %v749_v55 }
 0x134   :  { %751 = vmatprep.subr.bf16.mxu1 %v796_v0 }
 0x137   :  { %753 = vmatpush3.bf16.msra.mxu1 %v752_v58 }
 0x138   :  { %754 = vmatprep.subr.bf16.mxu1 %v796_v0  ;;  %v452_v0 = vld [vmem:[%s909_s4 + $0x3] ss:$0 sm:$0xff] }
 0x13b   :  { %756 = vmatpush3.bf16.msra.mxu1 %v755_v61 }
 0x1f1   :  { %v236_v39 = vpop.f32.mrb[0].mxu1 }
 0x1f2   :  { %v237_v40 = vadd.f32 %v448_v38, %v236_v39  ;;  %v590_v41 = vpop.f32.mrb[1].mxu1 }
 0x1f4   :  { %v241_v42 = vmul.f32 0.70710677, %v237_v40  ;;  %v240_v44 = vmul.f32 0.5, %v237_v40 }
 0x1f6   :  { %765 = verf.f32 %v241_v42 }
 0x200   :  { %v766_v43 = vpop.eup %765 }
 0x201   :  { %v243_v45 = vadd.f32 1.0, %v766_v43 }
 0x203   :  { %v244_v46 = vmul.f32 %v243_v45, %v240_v44 }
 0x205   :  { %624 = vmatmul.mubr.f32.vlgmr.msra.gmra.mrb[2].mxu0 %v244_v46 }
 0x2d8   :  { %v336_v63 = vpop.f32.mrb[2].mxu0 }
 0x2d9   :  { %v337_v2 = vadd.f32 %v450_v62, %v336_v63  ;;  %v625_v3 = vpop.f32.mrb[3].mxu0 }
 0x2db   :  { %v341_v4 = vmul.f32 0.70710677, %v337_v2  ;;  %v340_v6 = vmul.f32 0.5, %v337_v2 }
 0x2dd   :  { %767 = verf.f32 %v341_v4 }
 0x2e7   :  { %v768_v5 = vpop.eup %767 }
 0x2e8   :  { %v343_v7 = vadd.f32 1.0, %v768_v5 }
 0x2ea   :  { %v344_v8 = vmul.f32 %v343_v7, %v340_v6 }
 0x2ec   :  { %659 = vmatmul.mubr.f32.vlgmr.msra.gmra.mrb[2].mxu1 %v344_v8 }
 0x3bf   :  { %v436_v9 = vpop.f32.mrb[2].mxu1 }
 0x3c0   :  { %v437_v10 = vadd.f32 %v452_v0, %v436_v9  ;;  %v660_v11 = vpop.f32.mrb[3].mxu1 }
 0x3c2   :  { %440 = vst [vmem:[%s910_s5] sm:$0xff] %v437_v10 }
 0x3c3   :  { %445 = vsyncpa [#allocation4], 1 }

</bundles_post_ra>
